<compile_context>
chip_gen: v5e
topology: v5e:2x2
jax: 0.10.0
libtpu: 0.0.40
codegen_flags: <defaults>
</compile_context>

<pallas_src>
from functools import lru_cache, partial

import jax
import jax.numpy as jnp
import numpy as np
from jax.experimental import pallas as pl
from jax.experimental.pallas import tpu as pltpu


# Flip to jnp.bfloat16 only if the accuracy budget is looser than the 1e-3 used below
# (accumulation stays f32 either way via preferred_element_type).
_MATMUL_DTYPE = jnp.float32


def _fourier_kernel(x_ref, w_ref, f2_ref, g2_ref, o_ref):
    # x_ref : (B*C, H*W)      real input slab, lane-dense (H*W multiple of 128)
    # w_ref : (B*C, 2*m1*m2)  [w | w]  real spectral weights, tiled over batch
    # f2_ref: (H*W, 2*m1*m2)  fused truncated forward 2-D DFT: [cos(th) | -sin(th)]
    # g2_ref: (2*m1*m2, H*W)  fused inverse 2-D DFT (real part), / (H*W)
    # o_ref : (B*C, H*W)
    # Truncated forward 2-D DFT of all (batch, channel) rows in one MXU call -> [X_re | X_im].
    spec = jnp.dot(x_ref[...], f2_ref[...],
                   preferred_element_type=jnp.float32)                    # (B*C, 2*m1*m2)

    # Multiply the kept modes by the (real) learned weights (f32, VPU).
    spec = spec * w_ref[...]

    # Inverse 2-D DFT + real part in one MXU call; output is lane-dense (B*C, H*W).
    out = jnp.dot(spec.astype(g2_ref.dtype), g2_ref[...],
                  preferred_element_type=jnp.float32)                     # (B*C, H*W)
    o_ref[...] = out.astype(o_ref.dtype)


@lru_cache(maxsize=None)
def _fused_dft_matrices(H, W, m1, m2):
    """Kronecker (fused 2-D) truncated DFT / inverse-DFT matrices, real block form."""
    hk1 = np.arange(H)[:, None] * np.arange(m1)[None, :] / H              # (H, m1)
    wk2 = np.arange(W)[:, None] * np.arange(m2)[None, :] / W              # (W, m2)
    # theta[(h, w), (k1, k2)] = 2*pi*(k1*h/H + k2*w/W)
    theta = 2.0 * np.pi * (hk1[:, None, :, None] + wk2[None, :, None, :])
    theta = theta.reshape(H * W, m1 * m2)
    # forward: exp(-i*theta)  ->  [Re | Im] columns
    f2 = np.concatenate([np.cos(theta), -np.sin(theta)], axis=1)          # (HW, 2M)
    # inverse real part: (1/(H*W)) * (Y_re*cos(phi) - Y_im*sin(phi)), phi = theta^T
    g2 = np.concatenate([np.cos(theta.T), -np.sin(theta.T)], axis=0) / (H * W)   # (2M, HW)
    return f2.astype(np.float32), g2.astype(np.float32)


@partial(jax.jit, static_argnums=(2, 3))
def fourier_layer_2d(x, weights, modes1, modes2):
    """x: (B, C, H, W) float32; weights: (1, C, modes1, modes2) float32 (real)."""
    B, C, H, W = x.shape
    m1, m2 = modes1, modes2
    M2 = 2 * m1 * m2
    HW = H * W
    BC = B * C
    # Lane-dense layout assumption (full advertised perf): HW % 128 == 0 and BC % 8 == 0.
    # Other sizes still compile/run correctly (blocks equal the full array dims) but use
    # masked partial stores.

    f2_np, g2_np = _fused_dft_matrices(H, W, m1, m2)      # cached numpy; folded as constants
    f2 = jnp.asarray(f2_np, dtype=_MATMUL_DTYPE)
    g2 = jnp.asarray(g2_np, dtype=_MATMUL_DTYPE)

    # (1, C, m1, m2) -> (C, m1*m2) -> [w | w] -> tiled to (B*C, 2*m1*m2); row b*C + c gets w[c],
    # matching x.reshape(B*C, HW) row ordering.
    w_flat = weights.reshape(C, m1 * m2).astype(jnp.float32)
    w_cat = jnp.tile(jnp.concatenate([w_flat, w_flat], axis=-1), (B, 1))  # (B*C, 2M)

    x2 = x.reshape(BC, HW).astype(_MATMUL_DTYPE)                          # contiguous (free)

    itemsize = jnp.dtype(_MATMUL_DTYPE).itemsize
    cost = pl.CostEstimate(
        flops=2 * 2 * BC * HW * M2 + BC * M2,             # two dots + the mode multiply
        transcendentals=0,
        bytes_accessed=(BC * HW * itemsize                # x
                        + BC * HW * 4                     # out (f32)
                        + HW * M2 * itemsize              # f2
                        + M2 * HW * itemsize              # g2
                        + BC * M2 * 4),                   # w_cat (f32)
    )

    grid_spec = pltpu.PrefetchScalarGridSpec(
        num_scalar_prefetch=0,
        grid=(1,),                                        # single step: no TC split, no pipeline
        in_specs=[
            pl.BlockSpec((BC, HW), lambda i: (0, 0)),     # x, lane-dense loads
            pl.BlockSpec((BC, M2), lambda i: (0, 0)),     # weights
            pl.BlockSpec((HW, M2), lambda i: (0, 0)),     # fused forward DFT
            pl.BlockSpec((M2, HW), lambda i: (0, 0)),     # fused inverse DFT
        ],
        out_specs=pl.BlockSpec((BC, HW), lambda i: (0, 0)),               # lane-dense stores
    )

    out2 = pl.pallas_call(
        _fourier_kernel,
        out_shape=jax.ShapeDtypeStruct((BC, HW), jnp.float32),
        grid_spec=grid_spec,
        compiler_params=pltpu.CompilerParams(
            dimension_semantics=("arbitrary",)),
        cost_estimate=cost,
    )(x2, w_cat, f2, g2)

    return out2.reshape(B, C, H, W)


def fourier_layer_2d_ref(x, weights, modes1, modes2):
    """Pure-JAX reference mirroring the PyTorch forward."""
    x_ft = jnp.fft.fftn(x, axes=(-2, -1))
    out_ft = jnp.zeros_like(x_ft)
    out_ft = out_ft.at[:, :, :modes1, :modes2].set(
        x_ft[:, :, :modes1, :modes2] * weights)
    return jnp.real(jnp.fft.ifftn(out_ft, axes=(-2, -1)))


if __name__ == "__main__":
    B, C, H, W = 2, 4, 16, 16          # in_channels == out_channels == C
    modes1, modes2 = 8, 8

    key = jax.random.PRNGKey(0)
    kx, kw = jax.random.split(key)
    x = jax.random.normal(kx, (B, C, H, W), dtype=jnp.float32)
    # nn.Parameter(torch.randn(1, out_channels, modes1, modes2)) -> deterministic randn here
    weights = jax.random.normal(kw, (1, C, modes1, modes2), dtype=jnp.float32)

    out = fourier_layer_2d(x, weights, modes1, modes2)
    out = jax.block_until_ready(out)

    ref = jax.block_until_ready(fourier_layer_2d_ref(x, weights, modes1, modes2))
    assert out.shape == (B, C, H, W)
    np.testing.assert_allclose(np.asarray(out), np.asarray(ref), rtol=1e-3, atol=1e-3)

    print("KERNEL_OK")
</pallas_src>

<mosaic_0001>
module attributes {stable_mosaic.version = 11 : i64} {
  func.func @_fourier_kernel(%arg0: i32, %arg1: memref<8x256xf32, #tpu.memory_space<vmem>>, %arg2: memref<8x128xf32, #tpu.memory_space<vmem>>, %arg3: memref<256x128xf32, #tpu.memory_space<vmem>>, %arg4: memref<128x256xf32, #tpu.memory_space<vmem>>, %arg5: memref<8x256xf32, #tpu.memory_space<vmem>>) attributes {dimension_semantics = [#tpu.dimension_semantics<arbitrary>], iteration_bounds = array<i64: 1>, scalar_prefetch = 0 : i64, scratch_operands = 0 : i64, tpu.core_type = #tpu.core_type<tc>, window_params = [{pipeline_mode = #tpu.pipeline_mode<synchronous>, transform_indices = @transform_0, window_bounds = array<i64: 8, 256>}, {pipeline_mode = #tpu.pipeline_mode<synchronous>, transform_indices = @transform_1, window_bounds = array<i64: 8, 128>}, {pipeline_mode = #tpu.pipeline_mode<synchronous>, transform_indices = @transform_2, window_bounds = array<i64: 256, 128>}, {pipeline_mode = #tpu.pipeline_mode<synchronous>, transform_indices = @transform_3, window_bounds = array<i64: 128, 256>}, {pipeline_mode = #tpu.pipeline_mode<synchronous>, transform_indices = @transform_4, window_bounds = array<i64: 8, 256>}]} {
    %c0 = arith.constant 0 : index
    %c0_0 = arith.constant 0 : index
    %0 = vector.load %arg1[%c0, %c0_0] : memref<8x256xf32, #tpu.memory_space<vmem>>, vector<8x256xf32>
    %c0_1 = arith.constant 0 : index
    %c0_2 = arith.constant 0 : index
    %1 = vector.load %arg3[%c0_1, %c0_2] : memref<256x128xf32, #tpu.memory_space<vmem>>, vector<256x128xf32>
    %cst = arith.constant dense<0.000000e+00> : vector<8x128xf32>
    %2 = tpu.matmul %0, %1, %cst {dimension_numbers = #tpu.dot_dimension_numbers<[1], [0], [0], [1], [0, 0, 1, 1], [], []>} : vector<8x256xf32>, vector<256x128xf32>, vector<8x128xf32> -> vector<8x128xf32>
    %c0_3 = arith.constant 0 : index
    %c0_4 = arith.constant 0 : index
    %3 = vector.load %arg2[%c0_3, %c0_4] : memref<8x128xf32, #tpu.memory_space<vmem>>, vector<8x128xf32>
    %4 = arith.mulf %2, %3 : vector<8x128xf32>
    %c0_5 = arith.constant 0 : index
    %c0_6 = arith.constant 0 : index
    %5 = vector.load %arg4[%c0_5, %c0_6] : memref<128x256xf32, #tpu.memory_space<vmem>>, vector<128x256xf32>
    %cst_7 = arith.constant dense<0.000000e+00> : vector<8x256xf32>
    %6 = tpu.matmul %4, %5, %cst_7 {dimension_numbers = #tpu.dot_dimension_numbers<[1], [0], [0], [1], [0, 0, 1, 1], [], []>} : vector<8x128xf32>, vector<128x256xf32>, vector<8x256xf32> -> vector<8x256xf32>
    %c0_8 = arith.constant 0 : index
    %c0_9 = arith.constant 0 : index
    %7 = vector.load %arg5[%c0_8, %c0_9] : memref<8x256xf32, #tpu.memory_space<vmem>>, vector<8x256xf32>
    tpu.vector_store %arg5[%c0_8, %c0_9], %6 {strides = array<i32>} : memref<8x256xf32, #tpu.memory_space<vmem>>, vector<8x256xf32>,
    return
  }
  func.func @transform_0(%arg0: i32) -> (i32, i32) {
    %c0_i32 = arith.constant 0 : i32
    %c0_i32_0 = arith.constant 0 : i32
    %c0_i32_1 = arith.constant 0 : i32
    return %c0_i32, %c0_i32_0 : i32, i32
  }
  func.func @transform_1(%arg0: i32) -> (i32, i32) {
    %c0_i32 = arith.constant 0 : i32
    %c0_i32_0 = arith.constant 0 : i32
    %c0_i32_1 = arith.constant 0 : i32
    return %c0_i32, %c0_i32_0 : i32, i32
  }
  func.func @transform_2(%arg0: i32) -> (i32, i32) {
    %c0_i32 = arith.constant 0 : i32
    %c0_i32_0 = arith.constant 0 : i32
    %c0_i32_1 = arith.constant 0 : i32
    return %c0_i32, %c0_i32_0 : i32, i32
  }
  func.func @transform_3(%arg0: i32) -> (i32, i32) {
    %c0_i32 = arith.constant 0 : i32
    %c0_i32_0 = arith.constant 0 : i32
    %c0_i32_1 = arith.constant 0 : i32
    return %c0_i32, %c0_i32_0 : i32, i32
  }
  func.func @transform_4(%arg0: i32) -> (i32, i32) {
    %c0_i32 = arith.constant 0 : i32
    %c0_i32_0 = arith.constant 0 : i32
    %c0_i32_1 = arith.constant 0 : i32
    return %c0_i32, %c0_i32_0 : i32, i32
  }
}

</mosaic_0001>

<bundles_post_ra>
// kernel: fourier_layer_2d.1
= control target key start
LH: loop header
LB: loop body
LE: loop exit
PB: predicated region body
PF: predicated region fallthrough
CT: control target
= control target key end

     0   :  { %9 = vsyncpa [#allocation3], 0  ;;  %s315_s0 = inlined_call_operand.vmem [shape: f32[8,256], index: 0, kind: input, shape index: {}]   ;;  %s316_s1 = inlined_call_operand.vmem [shape: f32[8,128], index: 1, kind: input, shape index: {}]   ;;  %s317_s2 = inlined_call_operand.hbm [shape: f32[256,128], index: 2, kind: input, shape index: {}]   ;;  %s318_s3 = inlined_call_operand.hbm [shape: f32[128,256], index: 3, kind: input, shape index: {}]   ;;  %s319_s4 = inlined_call_operand.vmem [shape: f32[8,256], index: 4, kind: output, shape index: {}]  }
   0x1   :  { %s19_s17 = sshll.u32 %s317_s2, 4  ;;  %s20_s17 = int_to_ptr.hbm [resolvable:$true] %s19_s17 }
   0x2   :  { %10 = vsyncpa [#allocation5], 0  ;;  %s263_s18 = smov [#allocation2]   ;;  %s32_s22 = sshll.u32 %s318_s3, 4  ;;  %s33_s22 = int_to_ptr.hbm [resolvable:$true] %s32_s22 }
   0x3   :  { %s21_s19 = sshll.u32 %s263_s18, 4  ;;  %s264_s23 = smov 128   ;;  %s22_s19 = int_to_ptr.vmem [resolvable:$true] %s21_s19 }
   0x4   :  { %s265_s24 = smov 8   ;;  %s266_s25 = smov [#allocation4]  }
   0x5   :  { %27 = dma.hbm_to_vmem [thread:$0]  %s20_s17, 4096, %s22_s19, [#allocation3], %s264_s23, %s264_s23, %s265_s24  }
   0x6   :  { %s34_s26 = sshll.u32 %s266_s25, 4  ;;  %s267_s27 = smov 256   ;;  %s35_s26 = int_to_ptr.vmem [resolvable:$true] %s34_s26 }
   0x7   :  { %s268_s28 = smov 16  }
   0x8   :  { %40 = dma.hbm_to_vmem [thread:$0]  %s33_s22, 4096, %s35_s26, [#allocation5], %s267_s27, %s267_s27, %s268_s28  }
   0x9   :  { %259 = dma.done.wait [#allocation3], 4096  }
   0xa   :  { %260 = vsyncadd [#allocation3], 4294963200 }
   0xb   :  { %261 = dma.done.wait [#allocation5], 4096  }
   0xc   :  { %262 = vsyncadd [#allocation5], 4294963200  ;;  %v66_v0 = vld [vmem:[#allocation2 + $0x78] sm:$0xff]  ;;  %v65_v2 = vld [vmem:[#allocation2 + $0x70] sm:$0xff] }
   0xd   :  { %v82_v1 = vld [vmem:[#allocation2 + $0xf8] sm:$0xff]  ;;  %83 = vmatpush.msra.mxu0 %v66_v0  ;;  %v81_v3 = vld [vmem:[#allocation2 + $0xf0] sm:$0xff]  ;;  %v64_v4 = vld [vmem:[#allocation2 + $0x68] sm:$0xff] }
   0xe   :  { %103 = vmatpush.msra.mxu1 %v82_v1  ;;  %v80_v5 = vld [vmem:[#allocation2 + $0xe8] sm:$0xff]  ;;  %v63_v6 = vld [vmem:[#allocation2 + $0x60] sm:$0xff]  ;;  %v62_v8 = vld [vmem:[#allocation2 + $0x58] sm:$0xff] }
   0xf   :  { %84 = vmatpush.msra.mxu0 %v65_v2  ;;  %v79_v7 = vld [vmem:[#allocation2 + $0xe0] sm:$0xff]  ;;  %v78_v9 = vld [vmem:[#allocation2 + $0xd8] sm:$0xff]  ;;  %v61_v10 = vld [vmem:[#allocation2 + $0x50] sm:$0xff] }
  0x10   :  { %104 = vmatpush.msra.mxu1 %v81_v3  ;;  %v77_v11 = vld [vmem:[#allocation2 + $0xd0] sm:$0xff]  ;;  %v60_v12 = vld [vmem:[#allocation2 + $0x48] sm:$0xff]  ;;  %v59_v14 = vld [vmem:[#allocation2 + $0x40] sm:$0xff] }
  0x11   :  { %85 = vmatpush.msra.mxu0 %v64_v4  ;;  %v76_v13 = vld [vmem:[#allocation2 + $0xc8] sm:$0xff]  ;;  %v155_v15 = vld [vmem:[#allocation4 + $0xf0] sm:$0xff]  ;;  %v156_v16 = vld [vmem:[#allocation4 + $0xf8] sm:$0xff] }
  0x12   :  { %105 = vmatpush.msra.mxu1 %v80_v5  ;;  %v75_v17 = vld [vmem:[#allocation2 + $0xc0] sm:$0xff]  ;;  %157 = vmatpush.msra.mxu2 %v155_v15  ;;  %v154_v19 = vld [vmem:[#allocation4 + $0xe8] sm:$0xff]  ;;  %v151_v20 = vld [vmem:[#allocation4 + $0xd0] sm:$0xff] }
  0x13   :  { %86 = vmatpush.msra.mxu0 %v63_v6  ;;  %177 = vmatpush.msra.mxu3 %v156_v16  ;;  %v153_v18 = vld [vmem:[#allocation4 + $0xe0] sm:$0xff]  ;;  %v152_v21 = vld [vmem:[#allocation4 + $0xd8] sm:$0xff]  ;;  %v150_v25 = vld [vmem:[#allocation4 + $0xc8] sm:$0xff] }
  0x14   :  { %106 = vmatpush.msra.mxu1 %v79_v7  ;;  %v58_v22 = vld [vmem:[#allocation2 + $0x38] sm:$0xff]  ;;  %158 = vmatpush.msra.mxu2 %v153_v18  ;;  %v149_v24 = vld [vmem:[#allocation4 + $0xc0] sm:$0xff]  ;;  %v57_v26 = vld [vmem:[#allocation2 + $0x30] sm:$0xff] }
  0x15   :  { %87 = vmatpush.msra.mxu0 %v62_v8  ;;  %v74_v23 = vld [vmem:[#allocation2 + $0xb8] sm:$0xff]  ;;  %178 = vmatpush.msra.mxu3 %v154_v19  ;;  %v73_v27 = vld [vmem:[#allocation2 + $0xb0] sm:$0xff]  ;;  %v56_v30 = vld [vmem:[#allocation2 + $0x28] sm:$0xff] }
  0x16   :  { %107 = vmatpush.msra.mxu1 %v78_v9  ;;  %159 = vmatpush.msra.mxu2 %v151_v20  ;;  %v147_v28 = vld [vmem:[#allocation4 + $0xb0] sm:$0xff]  ;;  %v148_v29 = vld [vmem:[#allocation4 + $0xb8] sm:$0xff]  ;;  %v72_v31 = vld [vmem:[#allocation2 + $0xa8] sm:$0xff] }
  0x17   :  { %88 = vmatpush.msra.mxu0 %v61_v10  ;;  %179 = vmatpush.msra.mxu3 %v152_v21  ;;  %v145_v32 = vld [vmem:[#allocation4 + $0xa0] sm:$0xff]  ;;  %v146_v33 = vld [vmem:[#allocation4 + $0xa8] sm:$0xff]  ;;  %v143_v36 = vld [vmem:[#allocation4 + $0x90] sm:$0xff] }
  0x18   :  { %108 = vmatpush.msra.mxu1 %v77_v11  ;;  %160 = vmatpush.msra.mxu2 %v149_v24  ;;  %v55_v34 = vld [vmem:[#allocation2 + $0x20] sm:$0xff]  ;;  %v144_v37 = vld [vmem:[#allocation4 + $0x98] sm:$0xff]  ;;  %v142_v41 = vld [vmem:[#allocation4 + $0x88] sm:$0xff] }
  0x19   :  { %89 = vmatpush.msra.mxu0 %v60_v12  ;;  %180 = vmatpush.msra.mxu3 %v150_v25  ;;  %v71_v35 = vld [vmem:[#allocation2 + $0xa0] sm:$0xff]  ;;  %v54_v38 = vld [vmem:[#allocation2 + $0x18] sm:$0xff]  ;;  %v53_v42 = vld [vmem:[#allocation2 + $0x10] sm:$0xff] }
  0x1a   :  { %109 = vmatpush.msra.mxu1 %v76_v13  ;;  %161 = vmatpush.msra.mxu2 %v147_v28  ;;  %v70_v39 = vld [vmem:[#allocation2 + $0x98] sm:$0xff]  ;;  %v141_v40 = vld [vmem:[#allocation4 + $0x80] sm:$0xff]  ;;  %v69_v43 = vld [vmem:[#allocation2 + $0x90] sm:$0xff] }
  0x1b   :  { %90 = vmatpush.msra.mxu0 %v59_v14  ;;  %181 = vmatpush.msra.mxu3 %v148_v29  ;;  %v139_v44 = vld [vmem:[#allocation4 + $0x70] sm:$0xff]  ;;  %v140_v45 = vld [vmem:[#allocation4 + $0x78] sm:$0xff]  ;;  %v52_v46 = vld [vmem:[#allocation2 + $0x8] sm:$0xff] }
  0x1c   :  { %110 = vmatpush.msra.mxu1 %v75_v17  ;;  %162 = vmatpush.msra.mxu2 %v145_v32  ;;  %v68_v47 = vld [vmem:[#allocation2 + $0x88] sm:$0xff]  ;;  %v137_v48 = vld [vmem:[#allocation4 + $0x60] sm:$0xff]  ;;  %v135_v54 = vld [vmem:[#allocation4 + $0x50] sm:$0xff] }
  0x1d   :  { %91 = vmatpush.msra.mxu0 %v58_v22  ;;  %182 = vmatpush.msra.mxu3 %v146_v33  ;;  %v138_v49 = vld [vmem:[#allocation4 + $0x68] sm:$0xff]  ;;  %v51_v50 = vld [vmem:[#allocation2] sm:$0xff]  ;;  %v136_v55 = vld [vmem:[#allocation4 + $0x58] sm:$0xff] }
  0x1e   :  { %111 = vmatpush.msra.mxu1 %v74_v23  ;;  %163 = vmatpush.msra.mxu2 %v143_v36  ;;  %v67_v51 = vld [vmem:[#allocation2 + $0x80] sm:$0xff]  ;;  %v50_v53 = vld [vmem:[%s315_s0 + $0x8] sm:$0xff]  ;;  %v131_v58 = vld [vmem:[#allocation4 + $0x30] sm:$0xff] }
  0x1f   :  { %92 = vmatpush.msra.mxu0 %v57_v26  ;;  %183 = vmatpush.msra.mxu3 %v144_v37  ;;  %v49_v52 = vld [vmem:[%s315_s0] sm:$0xff]  ;;  %v134_v57 = vld [vmem:[#allocation4 + $0x48] sm:$0xff]  ;;  %v132_v59 = vld [vmem:[#allocation4 + $0x38] sm:$0xff] }
  0x20   :  { %112 = vmatpush.msra.mxu1 %v73_v27  ;;  %164 = vmatpush.msra.mxu2 %v141_v40  ;;  %v133_v56 = vld [vmem:[#allocation4 + $0x40] sm:$0xff]  ;;  %v130_v61 = vld [vmem:[#allocation4 + $0x28] sm:$0xff]  ;;  %v127_v62 = vld [vmem:[#allocation4 + $0x10] sm:$0xff] }
  0x21   :  { %93 = vmatpush.msra.mxu0 %v56_v30  ;;  %184 = vmatpush.msra.mxu3 %v142_v41  ;;  %v129_v60 = vld [vmem:[#allocation4 + $0x20] sm:$0xff]  ;;  %v128_v63 = vld [vmem:[#allocation4 + $0x18] sm:$0xff]  ;;  %v126_v1 = vld [vmem:[#allocation4 + $0x8] sm:$0xff] }
  0x22   :  { %113 = vmatpush.msra.mxu1 %v72_v31  ;;  %165 = vmatpush.msra.mxu2 %v139_v44  ;;  %v125_v0 = vld [vmem:[#allocation4] sm:$0xff] }
  0x23   :  { %94 = vmatpush.msra.mxu0 %v55_v34  ;;  %185 = vmatpush.msra.mxu3 %v140_v45  ;;  %v123_v4 = vld [vmem:[%s316_s1] sm:$0xff] }
  0x24   :  { %114 = vmatpush.msra.mxu1 %v71_v35  ;;  %166 = vmatpush.msra.mxu2 %v137_v48 }
  0x25   :  { %95 = vmatpush.msra.mxu0 %v54_v38  ;;  %186 = vmatpush.msra.mxu3 %v138_v49 }
  0x26   :  { %115 = vmatpush.msra.mxu1 %v70_v39  ;;  %167 = vmatpush.msra.mxu2 %v135_v54 }
  0x27   :  { %96 = vmatpush.msra.mxu0 %v53_v42  ;;  %187 = vmatpush.msra.mxu3 %v136_v55 }
  0x28   :  { %116 = vmatpush.msra.mxu1 %v69_v43  ;;  %168 = vmatpush.msra.mxu2 %v133_v56 }
  0x29   :  { %97 = vmatpush.msra.mxu0 %v52_v46  ;;  %188 = vmatpush.msra.mxu3 %v134_v57 }
  0x2a   :  { %117 = vmatpush.msra.mxu1 %v68_v47  ;;  %169 = vmatpush.msra.mxu2 %v131_v58 }
  0x2b   :  { %98 = vmatpush.msra.mxu0 %v51_v50  ;;  %189 = vmatpush.msra.mxu3 %v132_v59 }
  0x2c   :  { %118 = vmatpush.msra.mxu1 %v67_v51  ;;  %99 = vmatmul.f32.vlgmr.msra.gmra.mxu0 %v49_v52 }
  0x2d   :  { %119 = vmatmul.f32.vlgmr.msra.gmra.mxu1 %v50_v53  ;;  %170 = vmatpush.msra.mxu2 %v129_v60 }
  0x2e   :  { %190 = vmatpush.msra.mxu3 %v130_v61 }
  0x2f   :  { %171 = vmatpush.msra.mxu2 %v127_v62 }
  0x30   :  { %191 = vmatpush.msra.mxu3 %v128_v63 }
  0x31   :  { %172 = vmatpush.msra.mxu2 %v125_v0 }
  0x32   :  { %192 = vmatpush.msra.mxu3 %v126_v1 }
  0xa9   :  { %v100_v2 = vpop.f32.mrf.mxu0 }
  0xaa   :  { %v120_v3 = vpop.f32.mrf.mxu1 }
  0xab   :  { %v121_v5 = vadd.f32 %v120_v3, %v100_v2 }
  0xad   :  { %v124_v6 = vmul.f32 %v123_v4, %v121_v5 }
  0xaf   :  { %173 = vmatmul.f32.vlgmr.msra.gmra.mxu2 %v124_v6  ;;  %193 = vmatmul.f32.vlgmr.msra.gmra.mxu3 %v124_v6 }
 0x132   :  { %v174_v7 = vpop.f32.mrf.mxu2  ;;  %v194_v8 = vpop.f32.mrf.mxu3 }
 0x133   :  { %197 = vst [vmem:[%s319_s4] sm:$0xff] %v174_v7 }
 0x134   :  { %198 = vst [vmem:[%s319_s4 + $0x8] sm:$0xff] %v194_v8 }
 0x135   :  { %203 = vsyncpa [#allocation3], 1 }
 0x136   :  { %204 = vsyncpa [#allocation5], 1 }

</bundles_post_ra>
